<compile_context>
chip_gen: v7x
topology: tpu7x:2x2x1
jax: 0.10.0
libtpu: 0.0.40
codegen_flags: <defaults>
</compile_context>

<pallas_src>
import functools

import jax
import jax.numpy as jnp
from jax.experimental import pallas as pl
from jax.experimental.pallas import tpu as pltpu

_LANE = 128
_MIB = 1024 * 1024


def _hinge_kernel(out_ref, tgt_ref, res_ref):
    # Elementwise max(output - target, 0) on the VPU; no zeros materialized.
    res_ref[...] = jnp.maximum(out_ref[...] - tgt_ref[...], 0)


def _round_up(x: int, m: int) -> int:
    return ((x + m - 1) // m) * m


@functools.lru_cache(maxsize=1)
def _chip_config():
    """(num_tensorcores, tile_bytes_per_array, vmem_limit_cap_bytes)."""
    kind = ""
    try:
        kind = jax.devices()[0].device_kind.lower()
    except Exception:
        pass
    # Conservative default for unknown chips: single TC, 4 MiB tiles.
    num_tc, tile_bytes, vmem_cap = 1, 4 * _MIB, 96 * _MIB
    if "v7" in kind:
        # 2 TCs/chip, only 64 MiB physical VMEM/TC: keep buffers <= ~32 MiB.
        num_tc, tile_bytes, vmem_cap = 2, 4 * _MIB, 48 * _MIB
    elif "v6" in kind:
        # 1 TC, 128 MiB VMEM, 1.4 TB/s: big tiles amortize ~0.35us step cost.
        num_tc, tile_bytes, vmem_cap = 1, 8 * _MIB, 96 * _MIB
    elif "v5" in kind and ("lite" in kind or "5e" in kind or "v5e" in kind):
        num_tc, tile_bytes, vmem_cap = 1, 2 * _MIB, 64 * _MIB
    try:  # refine the VMEM cap from the actual hardware if available
        info = pltpu.get_tpu_info()
        phys = getattr(info, "vmem_capacity_bytes", None)
        if isinstance(phys, int) and phys > 0:
            vmem_cap = min(vmem_cap, max(phys - 16 * _MIB, 16 * _MIB))
    except Exception:
        pass
    return num_tc, tile_bytes, vmem_cap


def hinge_loss(output: jax.Array, target: jax.Array, *,
               small_input_fallback_elems: int = 2 * 1024 * 1024,
               _tile_rows_override=None) -> jax.Array:
    """Elementwise hinge: max(output - target, 0)."""
    assert output.shape == target.shape and output.dtype == target.dtype
    orig_shape = output.shape
    n = output.size
    dt = output.dtype
    itemsize = jnp.dtype(dt).itemsize
    # Minimum packing-friendly sublane count (f32: 8, bf16: 16, int8: 32).
    sub = max(8, 32 // itemsize)
    chunk = sub * _LANE

    # Fast path: tiny inputs (launch/DMA overhead dominates, XLA already at
    # roofline) or shapes that do not flatten into a lane-dense slab.
    if n == 0 or n < small_input_fallback_elems or n % chunk != 0:
        return jnp.maximum(output - target, 0)

    num_tc, tile_bytes, vmem_cap = _chip_config()

    # Free reshape (no padding, no extra HBM traffic) to a lane-dense slab.
    rows = n // _LANE
    x2d = output.reshape(rows, _LANE)
    t2d = target.reshape(rows, _LANE)

    if _tile_rows_override is not None:
        # Test hook: force a specific tile height (e.g. to exercise ragged blocks).
        tile_rows = min(rows, max(sub, (_tile_rows_override // sub) * sub))
    else:
        # Per-generation tile sizing, rounded down to the sublane multiple.
        tile_rows = min(tile_bytes // (_LANE * itemsize), rows)
        tile_rows = max(sub, (tile_rows // sub) * sub)

        if num_tc >= 2:
            # Multi-TensorCore chips only (v7x): prefer an even number of grid
            # steps so both TCs get balanced work, but never shrink a step
            # below ~1 MiB/array (per-step overhead would dominate).
            floor_rows = max(sub, ((1 * _MIB) // (_LANE * itemsize) // sub) * sub)
            steps = pl.cdiv(rows, tile_rows)
            if steps == 1:
                for target_steps in (4, 2):
                    cand = min(rows, _round_up(pl.cdiv(rows, target_steps), sub))
                    if cand >= floor_rows:
                        tile_rows = cand
                        break
            elif steps % 2 != 0 and steps <= 7:
                cand = min(rows, _round_up(pl.cdiv(rows, steps + 1), sub))
                if cand >= floor_rows:
                    tile_rows = cand

    grid = (pl.cdiv(rows, tile_rows),)  # ragged last block handled by Pallas

    # Explicit VMEM budget: 2 pipeline buffers x 3 arrays x tile + headroom,
    # clamped to a safe per-generation cap (keeps v7x under its 64 MiB VMEM
    # and unlocks >32 MiB of buffers on v6e).
    tile_bytes_actual = tile_rows * _LANE * itemsize
    vmem_limit = int(min(vmem_cap, max(16 * _MIB, 6 * tile_bytes_actual + 8 * _MIB)))

    res2d = pl.pallas_call(
        _hinge_kernel,
        out_shape=jax.ShapeDtypeStruct((rows, _LANE), dt),
        grid_spec=pltpu.PrefetchScalarGridSpec(
            num_scalar_prefetch=0,
            grid=grid,
            in_specs=[
                pl.BlockSpec((tile_rows, _LANE), lambda i: (i, 0)),
                pl.BlockSpec((tile_rows, _LANE), lambda i: (i, 0)),
            ],
            out_specs=pl.BlockSpec((tile_rows, _LANE), lambda i: (i, 0)),
        ),
        compiler_params=pltpu.CompilerParams(
            dimension_semantics=("parallel",),
            vmem_limit_bytes=vmem_limit,
        ),
    )(x2d, t2d)

    return res2d.reshape(orig_shape)


if __name__ == "__main__":
    key = jax.random.PRNGKey(0)
    k1, k2, k3, k4, k5, k6 = jax.random.split(key, 6)

    # Small NCHW demo inputs consistent with the module's output/target pair.
    shape_small = (2, 4, 16, 16)
    out_s = jax.random.normal(k1, shape_small, dtype=jnp.float32)
    tgt_s = jax.random.normal(k2, shape_small, dtype=jnp.float32)
    ref_s = jnp.maximum(out_s - tgt_s, 0.0)

    # Force the Pallas path on the small demo so the kernel itself runs.
    res_s = jax.block_until_ready(
        hinge_loss(out_s, tgt_s, small_input_fallback_elems=0))
    assert res_s.shape == shape_small and res_s.dtype == out_s.dtype
    assert jnp.allclose(res_s, ref_s, atol=1e-6), "mismatch (small, pallas)"

    # Default wrapper routes this size to the XLA fast path; must agree too.
    res_fast = jax.block_until_ready(hinge_loss(out_s, tgt_s))
    assert jnp.allclose(res_fast, ref_s, atol=1e-6), "mismatch (fast path)"

    # Ragged last grid block: rows=4104, forced tile of 512 rows -> 9 steps,
    # final block only 8 rows (exercises the masked partial output store).
    shape_rag = (4104, 128)
    out_r = jax.random.normal(k3, shape_rag, dtype=jnp.float32)
    tgt_r = jax.random.normal(k4, shape_rag, dtype=jnp.float32)
    res_r = jax.block_until_ready(
        hinge_loss(out_r, tgt_r, small_input_fallback_elems=0,
                   _tile_rows_override=512))
    ref_r = jnp.maximum(out_r - tgt_r, 0.0)
    assert jnp.allclose(res_r, ref_r, atol=1e-6), "mismatch (ragged, pallas)"

    # bf16 coverage (different sublane packing), forced through Pallas.
    shape_bf = (2, 4, 32, 64)
    out_h = jax.random.normal(k5, shape_bf, dtype=jnp.bfloat16)
    tgt_h = jax.random.normal(k6, shape_bf, dtype=jnp.bfloat16)
    res_h = jax.block_until_ready(
        hinge_loss(out_h, tgt_h, small_input_fallback_elems=0))
    ref_h = jnp.maximum(out_h - tgt_h, jnp.bfloat16(0))
    assert res_h.dtype == jnp.bfloat16
    assert jnp.allclose(res_h.astype(jnp.float32), ref_h.astype(jnp.float32),
                        atol=1e-2), "mismatch (bf16, pallas)"

    print("KERNEL_OK")
</pallas_src>

<mosaic_0001>
module attributes {stable_mosaic.version = 11 : i64} {
  func.func @_hinge_kernel(%arg0: i32, %arg1: memref<16x128xf32, #tpu.memory_space<vmem>>, %arg2: memref<16x128xf32, #tpu.memory_space<vmem>>, %arg3: memref<16x128xf32, #tpu.memory_space<vmem>>) attributes {dimension_semantics = [#tpu.dimension_semantics<parallel>], iteration_bounds = array<i64: 1>, scalar_prefetch = 0 : i64, scratch_operands = 0 : i64, tpu.core_type = #tpu.core_type<tc>, window_params = [{transform_indices = @transform_0, window_bounds = array<i64: 16, 128>}, {transform_indices = @transform_1, window_bounds = array<i64: 16, 128>}, {transform_indices = @transform_2, window_bounds = array<i64: 16, 128>}]} {
    %c0 = arith.constant 0 : index
    %c0_0 = arith.constant 0 : index
    %0 = vector.load %arg1[%c0, %c0_0] : memref<16x128xf32, #tpu.memory_space<vmem>>, vector<16x128xf32>
    %c0_1 = arith.constant 0 : index
    %c0_2 = arith.constant 0 : index
    %1 = vector.load %arg2[%c0_1, %c0_2] : memref<16x128xf32, #tpu.memory_space<vmem>>, vector<16x128xf32>
    %2 = arith.subf %0, %1 : vector<16x128xf32>
    %cst = arith.constant 0.000000e+00 : f32
    %3 = vector.broadcast %cst : f32 to vector<16x128xf32>
    %4 = arith.maximumf %2, %3 : vector<16x128xf32>
    %c0_3 = arith.constant 0 : index
    %c0_4 = arith.constant 0 : index
    %5 = vector.load %arg3[%c0_3, %c0_4] : memref<16x128xf32, #tpu.memory_space<vmem>>, vector<16x128xf32>
    tpu.vector_store %arg3[%c0_3, %c0_4], %4 {strides = array<i32>} : memref<16x128xf32, #tpu.memory_space<vmem>>, vector<16x128xf32>,
    return
  }
  func.func @transform_0(%arg0: i32) -> (i32, i32) {
    %c0_i32 = arith.constant 0 : i32
    %c0_i32_0 = arith.constant 0 : i32
    return %arg0, %c0_i32 : i32, i32
  }
  func.func @transform_1(%arg0: i32) -> (i32, i32) {
    %c0_i32 = arith.constant 0 : i32
    %c0_i32_0 = arith.constant 0 : i32
    return %arg0, %c0_i32 : i32, i32
  }
  func.func @transform_2(%arg0: i32) -> (i32, i32) {
    %c0_i32 = arith.constant 0 : i32
    %c0_i32_0 = arith.constant 0 : i32
    return %arg0, %c0_i32 : i32, i32
  }
}

</mosaic_0001>

<bundles_post_ra>
// kernel: tpu_custom_call.1
= control target key start
LH: loop header
LB: loop body
LE: loop exit
PB: predicated region body
PF: predicated region fallthrough
CT: control target
= control target key end

     0   :  { %7 = vsyncpa [#allocation3], 0  ;;  %s210_s0 = inlined_call_operand.hbm [shape: f32[16,128], index: 0, kind: input, shape index: {}]   ;;  %s211_s1 = inlined_call_operand.hbm [shape: f32[16,128], index: 1, kind: input, shape index: {}]   ;;  %s212_s2 = inlined_call_operand.hbm [shape: f32[16,128], index: 2, kind: output, shape index: {}]  }
   0x1   :  { %8 = vsyncpa [#allocation6], 0 }
   0x2   :  { %9 = vsyncpa [#allocation4], 0  ;;  %s145_s9 = smov [#allocation2]   ;;  %s73_s13 = scalar_lea.hbm %s210_s0, 256 }
   0x3   :  { %s15_s10 = sshll.u32 %s145_s9, 4  ;;  %p74_p0 = scmp.ne.s32.totalorder %s210_s0, %s73_s13  ;;  %s16_s10 = int_to_ptr.vmem [resolvable:$true] %s15_s10 }
   0x4   :  { %p77_p1 = scmp.lt.u32.totalorder %s73_s13, %s210_s0 }
   0x6   :  { %p79_p2 = pnand %p77_p1, %p74_p0 }
   0x8   :  { %82 = shalt.err (!%p79_p2)
}
   0x9   :  { %s83_s18 = scalar_lea.vmem %s16_s10, 256  ;;  %p88_p4 = scmp.lt.s32.totalorder %s16_s10, %s16_s10 }
   0xa   :  { %p84_p3 = scmp.ne.s32.totalorder %s16_s10, %s83_s18  ;;  %p89_p5 = scmp.lt.s32.totalorder %s83_s18, %s83_s18 }
   0xc   :  { %p90_p6 = por %p89_p5, %p88_p4 }
   0xe   :  { %p91_p7 = pnand %p90_p6, %p84_p3 }
  0x10   :  { %94 = shalt.err (!%p91_p7)
}
  0x11   :  { %s146_s19 = smov 128   ;;  %s147_s20 = smov 8  }
  0x12   :  { %21 = dma.hbm_to_vmem [thread:$0]  %s210_s0, 256, %s16_s10, [#allocation3], %s146_s19, %s146_s19, %s147_s20  }
  0x13   :  { %s148_s23 = smov [#allocation5]   ;;  %s95_s27 = scalar_lea.hbm %s211_s1, 256 }
  0x14   :  { %s27_s24 = sshll.u32 %s148_s23, 4  ;;  %p96_p8 = scmp.ne.s32.totalorder %s211_s1, %s95_s27  ;;  %s28_s24 = int_to_ptr.vmem [resolvable:$true] %s27_s24 }
  0x15   :  { %p99_p9 = scmp.lt.u32.totalorder %s95_s27, %s211_s1 }
  0x17   :  { %p101_p10 = pnand %p99_p9, %p96_p8 }
  0x19   :  { %104 = shalt.err (!%p101_p10)
}
  0x1a   :  { %s105_s4 = scalar_lea.vmem %s28_s24, 256  ;;  %p110_p12 = scmp.lt.s32.totalorder %s28_s24, %s28_s24 }
  0x1b   :  { %p106_p11 = scmp.ne.s32.totalorder %s28_s24, %s105_s4  ;;  %p111_p13 = scmp.lt.s32.totalorder %s105_s4, %s105_s4 }
  0x1d   :  { %p112_p0 = por %p111_p13, %p110_p12 }
  0x1f   :  { %p113_p1 = pnand %p112_p0, %p106_p11 }
  0x21   :  { %116 = shalt.err (!%p113_p1)
}
  0x22   :  { %33 = dma.hbm_to_vmem [thread:$0]  %s211_s1, 256, %s28_s24, [#allocation6], %s146_s19, %s146_s19, %s147_s20  }
  0x23   :  { %139 = dma.done.wait [#allocation3], 256  }
  0x24   :  { %140 = vsyncadd [#allocation3], 4294967040 }
  0x25   :  { %141 = dma.done.wait [#allocation6], 256  }
  0x26   :  { %142 = vsyncadd [#allocation6], 4294967040  ;;  %v40_v0 = vld [vmem:[#allocation2] sm:$0xff]  ;;  %v42_v1 = vld [vmem:[#allocation5] sm:$0xff]  ;;  %s149_s6 = smov [#allocation7]  }
  0x27   :  { %v41_v2 = vld [vmem:[#allocation2 + $0x8] sm:$0xff]  ;;  %v44_v3 = vsub.f32 %v40_v0, %v42_v1  ;;  %v43_v4 = vld [vmem:[#allocation5 + $0x8] sm:$0xff]  ;;  %s55_s7 = sshll.u32 %s149_s6, 4  ;;  %s56_s7 = int_to_ptr.vmem [resolvable:$true] %s55_s7 }
  0x28   :  { %v45_v5 = vsub.f32 %v41_v2, %v43_v4  ;;  %s117_s8 = scalar_lea.vmem %s56_s7, 256  ;;  %p122_p3 = scmp.lt.s32.totalorder %s56_s7, %s56_s7 }
  0x29   :  { %v46_v6 = vmax.f32 %v44_v3, 0.0  ;;  %p118_p2 = scmp.ne.s32.totalorder %s56_s7, %s117_s8  ;;  %p123_p4 = scmp.lt.s32.totalorder %s117_s8, %s117_s8 }
  0x2a   :  { %v47_v7 = vmax.f32 %v45_v5, 0.0 }
  0x2b   :  { %48 = vst [vmem:[#allocation7] sm:$0xff] %v46_v6  ;;  %p124_p5 = por %p123_p4, %p122_p3 }
  0x2c   :  { %49 = vst [vmem:[#allocation7 + $0x8] sm:$0xff] %v47_v7 }
  0x2d   :  { %p125_p6 = pnand %p124_p5, %p118_p2 }
  0x2f   :  { %128 = shalt.err (!%p125_p6)
}
  0x30   :  { %s129_s10 = scalar_lea.hbm %s212_s2, 256 }
  0x31   :  { %p130_p7 = scmp.ne.s32.totalorder %s212_s2, %s129_s10  ;;  %p133_p8 = scmp.lt.u32.totalorder %s129_s10, %s212_s2 }
  0x33   :  { %p135_p9 = pnand %p133_p8, %p130_p7 }
  0x35   :  { %138 = shalt.err (!%p135_p9)
}
  0x36   :  { %61 = dma.vmem_to_hbm [thread:$0]  %s56_s7, 256, %s212_s2, [#allocation4], %s146_s19, %s146_s19, %s147_s20  }
  0x37   :  { %143 = dma.done.wait [#allocation4], 256  }
  0x38   :  { %144 = vsyncadd [#allocation4], 4294967040 }
  0x39   :  { %65 = vsyncpa [#allocation3], 1 }
  0x3a   :  { %66 = vsyncpa [#allocation6], 1 }
  0x3b   :  { %67 = vsyncpa [#allocation4], 1 }

</bundles_post_ra>
